<compile_context>
chip_gen: v6e
topology: v6e:2x2x1
jax: 0.10.0
libtpu: 0.0.40
codegen_flags: <defaults>
</compile_context>

<pallas_src>
import functools

import jax
import jax.numpy as jnp
from jax.experimental import pallas as pl
from jax.experimental.pallas import tpu as pltpu


def _attention3_kernel(q_ref, k_ref, v_ref, wq_ref, wk_ref, wv_ref,
                       wp_ref, bp_ref, o_ref, *, num_heads, head_dim):
    """One (batch, q-tile) step, transposed layout.

    q_ref : (1, Cq, TQ)   q^T tile (scale already folded into wq)
    k_ref : (1, Ck, Nk)   k^T          v_ref : (1, Cv, Nk)   v^T
    wq/wk/wv : (in_dim, C*)  PyTorch (out, in) weights -- used as-is (W @ x^T)
    wp : (in_dim, in_dim), bp : (in_dim, 1)
    o_ref : (1, in_dim, TQ)  out^T tile
    """
    f32 = jnp.float32
    qT = q_ref[0]                     # (Cq, TQ)
    kT = k_ref[0]                     # (Ck, Nk)
    vT = v_ref[0]                     # (Cv, Nk)

    # Projections: W @ x^T  (no weight transpose in-kernel, f32 accumulation).
    qpT = jnp.dot(wq_ref[...], qT, preferred_element_type=f32)   # (in_dim, TQ)
    kpT = jnp.dot(wk_ref[...], kT, preferred_element_type=f32)   # (in_dim, Nk)
    vpT = jnp.dot(wv_ref[...], vT, preferred_element_type=f32)   # (in_dim, Nk)

    H, Dh = num_heads, head_dim
    in_dim = H * Dh
    TQ = qpT.shape[-1]
    Nk = kpT.shape[-1]

    # Sublane-aligned head splits (32 -> 4 x 8): no lane relayout.
    qh = qpT.reshape(H, Dh, TQ)                        # (H, Dh, TQ)
    kh = jnp.swapaxes(kpT.reshape(H, Dh, Nk), 1, 2)    # (H, Nk, Dh)  tiny transpose
    vh = vpT.reshape(H, Dh, Nk)                        # (H, Dh, Nk)

    dt = q_ref.dtype   # MXU operand dtype (f32, or bf16 on v6e/v7x path)

    # All-head scores^T in one batched contraction: (H, Nk, TQ), lane-dense.
    s = jnp.einsum('hkd,hdq->hkq', kh.astype(dt), qh.astype(dt),
                   preferred_element_type=f32)

    # Softmax over keys (sublane axis), kept in f32 on the VPU/EUP.
    s = s - jnp.max(s, axis=1, keepdims=True)
    p = jnp.exp(s)
    p = p * pl.reciprocal(jnp.sum(p, axis=1, keepdims=True), approx=True)

    # (attn @ V)^T for all heads: (H, Dh, TQ).
    oT = jnp.einsum('hdk,hkq->hdq', vh.astype(dt), p.astype(dt),
                    preferred_element_type=f32)
    # Head concat == sublane merge (4, 8, TQ) -> (32, TQ): free, fused into proj.
    oT = oT.reshape(in_dim, TQ)

    yT = jnp.dot(wp_ref[...], oT.astype(dt), preferred_element_type=f32) + bp_ref[...]
    o_ref[0] = yT.astype(o_ref.dtype)                  # (in_dim, TQ) lane-dense store


def attention_3_forward(q, k, v, params, *, num_heads, scale,
                        tq=None, mxu_dtype=None):
    """q: (B, Nq, q_dim), k: (B, Nk, v_dim), v: (B, Nk, k_dim) -> (B, Nq, in_dim).

    mxu_dtype=jnp.bfloat16 feeds bf16 operands to the MXU (f32 accumulation,
    f32 softmax) -- recommended on v6e / v7x.
    """
    B, Nq, Cq = q.shape
    _, Nk, Ck = k.shape
    _, Nk2, Cv = v.shape
    assert Nk == Nk2

    wq, wk, wv, wp, bp = (params["wq"], params["wk"], params["wv"],
                          params["wp"], params["bp"])
    in_dim = wq.shape[0]
    head_dim = in_dim // num_heads
    out_dtype = q.dtype

    # Fold the attention scale into Wq (free; removes per-element multiplies).
    wq_s = wq * jnp.asarray(scale, wq.dtype)

    # Lane-dense transposed layout: features -> sublanes, tokens -> lanes.
    q_t = jnp.swapaxes(q, 1, 2)            # (B, Cq, Nq)
    k_t = jnp.swapaxes(k, 1, 2)            # (B, Ck, Nk)
    v_t = jnp.swapaxes(v, 1, 2)            # (B, Cv, Nk)
    bp2 = bp.astype(jnp.float32).reshape(in_dim, 1)

    if mxu_dtype is not None:
        q_t = q_t.astype(mxu_dtype)
        k_t = k_t.astype(mxu_dtype)
        v_t = v_t.astype(mxu_dtype)
        wq_s = wq_s.astype(mxu_dtype)
        wk = wk.astype(mxu_dtype)
        wv = wv.astype(mxu_dtype)
        wp = wp.astype(mxu_dtype)

    # Query-tile size: biggest of {512, 256, 128} dividing Nq (fits v7x VMEM
    # comfortably), else the full Nq.
    if tq is None:
        tq = Nq
        for cand in (512, 256, 128):
            if Nq % cand == 0:
                tq = cand
                break
    assert Nq % tq == 0

    kernel = functools.partial(_attention3_kernel,
                               num_heads=num_heads, head_dim=head_dim)

    out_t = pl.pallas_call(
        kernel,
        out_shape=jax.ShapeDtypeStruct((B, in_dim, Nq), out_dtype),
        grid_spec=pltpu.PrefetchScalarGridSpec(
            num_scalar_prefetch=0,
            grid=(B, Nq // tq),
            in_specs=[
                pl.BlockSpec((1, Cq, tq), lambda b, t: (b, 0, t)),       # q^T tile
                pl.BlockSpec((1, Ck, Nk), lambda b, t: (b, 0, 0)),       # k^T (resident)
                pl.BlockSpec((1, Cv, Nk), lambda b, t: (b, 0, 0)),       # v^T (resident)
                pl.BlockSpec((in_dim, Cq), lambda b, t: (0, 0)),         # fc_q.weight * scale
                pl.BlockSpec((in_dim, Ck), lambda b, t: (0, 0)),         # fc_k.weight
                pl.BlockSpec((in_dim, Cv), lambda b, t: (0, 0)),         # fc_v.weight
                pl.BlockSpec((in_dim, in_dim), lambda b, t: (0, 0)),     # proj.weight
                pl.BlockSpec((in_dim, 1), lambda b, t: (0, 0)),          # proj.bias
            ],
            out_specs=pl.BlockSpec((1, in_dim, tq), lambda b, t: (b, 0, t)),
        ),
        compiler_params=pltpu.CompilerParams(
            dimension_semantics=("parallel", "parallel")),
    )(q_t, k_t, v_t, wq_s, wk, wv, wp, bp2)

    # Back to the module's (B, Nq, in_dim) layout (wrapper-side layout plumbing).
    return jnp.swapaxes(out_t, 1, 2)


def attention_3_reference(q, k, v, params, *, num_heads, scale):
    """Pure-JAX reference mirroring the PyTorch forward."""
    wq, wk, wv, wp, bp = (params["wq"], params["wk"], params["wv"],
                          params["wp"], params["bp"])
    B, Nq, _ = q.shape
    in_dim = wq.shape[0]
    hd = in_dim // num_heads

    qp = (q @ wq.T).reshape(B, Nq, num_heads, hd).transpose(0, 2, 1, 3)
    kp = (k @ wk.T).reshape(B, -1, num_heads, hd).transpose(0, 2, 1, 3)
    vp = (v @ wv.T).reshape(B, -1, num_heads, hd).transpose(0, 2, 1, 3)

    attn = (qp * scale) @ kp.transpose(0, 1, 3, 2)
    attn = jax.nn.softmax(attn, axis=-1)
    x = (attn @ vp).transpose(0, 2, 1, 3).reshape(B, Nq, in_dim)
    return x @ wp.T + bp


if __name__ == "__main__":
    # Small, module-consistent shapes (Nq stands in for the hard-coded 4096).
    B = 2
    Nq = 256
    Nk = 12          # hard-coded in the module
    q_dim = 32       # fc_q input features
    v_dim = 16       # fc_k input features (module wires fc_k = Linear(v_dim, in_dim))
    k_dim = 24       # fc_v input features (module wires fc_v = Linear(k_dim, in_dim))
    num_heads = 4
    in_dim = 32
    scale = float((q_dim // num_heads) ** (-0.5))   # qk_scale=None path

    key = jax.random.PRNGKey(0)
    kq, kk, kv, kwq, kwk, kwv, kwp, kbp = jax.random.split(key, 8)

    q = jax.random.normal(kq, (B, Nq, q_dim), dtype=jnp.float32)
    k = jax.random.normal(kk, (B, Nk, v_dim), dtype=jnp.float32)
    v = jax.random.normal(kv, (B, Nk, k_dim), dtype=jnp.float32)

    params = {
        "wq": jax.random.normal(kwq, (in_dim, q_dim), dtype=jnp.float32) * 0.1,
        "wk": jax.random.normal(kwk, (in_dim, v_dim), dtype=jnp.float32) * 0.1,
        "wv": jax.random.normal(kwv, (in_dim, k_dim), dtype=jnp.float32) * 0.1,
        "wp": jax.random.normal(kwp, (in_dim, in_dim), dtype=jnp.float32) * 0.1,
        "bp": jax.random.normal(kbp, (in_dim,), dtype=jnp.float32) * 0.1,
    }

    ref = attention_3_reference(q, k, v, params, num_heads=num_heads, scale=scale)

    # f32 MXU path (v5e-friendly).
    out = attention_3_forward(q, k, v, params, num_heads=num_heads, scale=scale,
                              tq=128)
    out = jax.block_until_ready(out)
    assert out.shape == (B, Nq, in_dim)
    # approx reciprocal in the softmax -> slightly relaxed tolerance.
    assert jnp.allclose(out, ref, atol=5e-3, rtol=5e-3), "f32 kernel mismatch"

    # bf16-MXU path (v6e / v7x recommendation): bf16 operands, f32 accumulation.
    out_bf16 = attention_3_forward(q, k, v, params, num_heads=num_heads,
                                   scale=scale, tq=128, mxu_dtype=jnp.bfloat16)
    out_bf16 = jax.block_until_ready(out_bf16)
    assert out_bf16.shape == (B, Nq, in_dim)
    assert jnp.allclose(out_bf16, ref, atol=5e-2, rtol=5e-2), "bf16 kernel mismatch"

    print("KERNEL_OK")
</pallas_src>

<mosaic_0001>
module attributes {stable_mosaic.version = 11 : i64} {
  func.func @_attention3_kernel(%arg0: i32, %arg1: i32, %arg2: memref<1x32x128xf32, #tpu.memory_space<vmem>>, %arg3: memref<1x16x12xf32, #tpu.memory_space<vmem>>, %arg4: memref<1x24x12xf32, #tpu.memory_space<vmem>>, %arg5: memref<32x32xf32, #tpu.memory_space<vmem>>, %arg6: memref<32x16xf32, #tpu.memory_space<vmem>>, %arg7: memref<32x24xf32, #tpu.memory_space<vmem>>, %arg8: memref<32x32xf32, #tpu.memory_space<vmem>>, %arg9: memref<32x1xf32, #tpu.memory_space<vmem>>, %arg10: memref<1x32x128xf32, #tpu.memory_space<vmem>>) attributes {dimension_semantics = [#tpu.dimension_semantics<parallel>, #tpu.dimension_semantics<parallel>], iteration_bounds = array<i64: 2, 2>, scalar_prefetch = 0 : i64, scratch_operands = 0 : i64, tpu.core_type = #tpu.core_type<tc>, window_params = [{transform_indices = @transform_0, window_bounds = array<i64: 1, 32, 128>}, {transform_indices = @transform_1, window_bounds = array<i64: 1, 16, 12>}, {transform_indices = @transform_2, window_bounds = array<i64: 1, 24, 12>}, {pipeline_mode = #tpu.pipeline_mode<synchronous>, transform_indices = @transform_3, window_bounds = array<i64: 32, 32>}, {pipeline_mode = #tpu.pipeline_mode<synchronous>, transform_indices = @transform_4, window_bounds = array<i64: 32, 16>}, {pipeline_mode = #tpu.pipeline_mode<synchronous>, transform_indices = @transform_5, window_bounds = array<i64: 32, 24>}, {pipeline_mode = #tpu.pipeline_mode<synchronous>, transform_indices = @transform_6, window_bounds = array<i64: 32, 32>}, {pipeline_mode = #tpu.pipeline_mode<synchronous>, transform_indices = @transform_7, window_bounds = array<i64: 32, 1>}, {transform_indices = @transform_8, window_bounds = array<i64: 1, 32, 128>}]} {
    %c0 = arith.constant 0 : index
    %c0_0 = arith.constant 0 : index
    %c0_1 = arith.constant 0 : index
    %0 = vector.load %arg2[%c0, %c0_0, %c0_1] : memref<1x32x128xf32, #tpu.memory_space<vmem>>, vector<1x32x128xf32>
    %1 = vector.shape_cast %0 : vector<1x32x128xf32> to vector<32x128xf32>
    %c0_2 = arith.constant 0 : index
    %c0_3 = arith.constant 0 : index
    %c0_4 = arith.constant 0 : index
    %2 = vector.load %arg3[%c0_2, %c0_3, %c0_4] : memref<1x16x12xf32, #tpu.memory_space<vmem>>, vector<1x16x12xf32>
    %3 = vector.shape_cast %2 : vector<1x16x12xf32> to vector<16x12xf32>
    %c0_5 = arith.constant 0 : index
    %c0_6 = arith.constant 0 : index
    %c0_7 = arith.constant 0 : index
    %4 = vector.load %arg4[%c0_5, %c0_6, %c0_7] : memref<1x24x12xf32, #tpu.memory_space<vmem>>, vector<1x24x12xf32>
    %5 = vector.shape_cast %4 : vector<1x24x12xf32> to vector<24x12xf32>
    %c0_8 = arith.constant 0 : index
    %c0_9 = arith.constant 0 : index
    %6 = vector.load %arg5[%c0_8, %c0_9] : memref<32x32xf32, #tpu.memory_space<vmem>>, vector<32x32xf32>
    %cst = arith.constant dense<0.000000e+00> : vector<32x128xf32>
    %7 = tpu.matmul %6, %1, %cst {dimension_numbers = #tpu.dot_dimension_numbers<[1], [0], [0], [1], [0, 0, 1, 1], [], []>} : vector<32x32xf32>, vector<32x128xf32>, vector<32x128xf32> -> vector<32x128xf32>
    %c0_10 = arith.constant 0 : index
    %c0_11 = arith.constant 0 : index
    %8 = vector.load %arg6[%c0_10, %c0_11] : memref<32x16xf32, #tpu.memory_space<vmem>>, vector<32x16xf32>
    %cst_12 = arith.constant dense<0.000000e+00> : vector<32x12xf32>
    %9 = tpu.matmul %8, %3, %cst_12 {dimension_numbers = #tpu.dot_dimension_numbers<[1], [0], [0], [1], [0, 0, 1, 1], [], []>} : vector<32x16xf32>, vector<16x12xf32>, vector<32x12xf32> -> vector<32x12xf32>
    %c0_13 = arith.constant 0 : index
    %c0_14 = arith.constant 0 : index
    %10 = vector.load %arg7[%c0_13, %c0_14] : memref<32x24xf32, #tpu.memory_space<vmem>>, vector<32x24xf32>
    %cst_15 = arith.constant dense<0.000000e+00> : vector<32x12xf32>
    %11 = tpu.matmul %10, %5, %cst_15 {dimension_numbers = #tpu.dot_dimension_numbers<[1], [0], [0], [1], [0, 0, 1, 1], [], []>} : vector<32x24xf32>, vector<24x12xf32>, vector<32x12xf32> -> vector<32x12xf32>
    %12 = vector.shape_cast %7 : vector<32x128xf32> to vector<4x8x128xf32>
    %13 = vector.shape_cast %9 : vector<32x12xf32> to vector<4x8x12xf32>
    %14 = tpu.transpose %13, [0, 2, 1] : vector<4x8x12xf32> -> vector<4x12x8xf32>
    %15 = vector.shape_cast %11 : vector<32x12xf32> to vector<4x8x12xf32>
    "tpu.trace_start"() <{level = 10 : i32, message = "hkd,hdq->hkq"}> : () -> ()
    %cst_16 = arith.constant dense<0.000000e+00> : vector<4x12x128xf32>
    %16 = tpu.matmul %14, %12, %cst_16 {dimension_numbers = #tpu.dot_dimension_numbers<[2], [1], [1], [2], [0, 0, 0, 1, 1, 2], [0], [0]>} : vector<4x12x8xf32>, vector<4x8x128xf32>, vector<4x12x128xf32> -> vector<4x12x128xf32>
    "tpu.trace_stop"() : () -> ()
    %cst_17 = arith.constant dense<0xFF800000> : vector<4x128xf32>
    %17 = vector.multi_reduction <maximumf>, %16, %cst_17 [1] : vector<4x12x128xf32> to vector<4x128xf32>
    %18 = vector.shape_cast %17 : vector<4x128xf32> to vector<4x1x128xf32>
    %19 = vector.broadcast %18 : vector<4x1x128xf32> to vector<4x12x128xf32>
    %20 = arith.subf %16, %19 : vector<4x12x128xf32>
    %21 = math.exp %20 : vector<4x12x128xf32>
    %cst_18 = arith.constant dense<0.000000e+00> : vector<4x128xf32>
    %22 = vector.multi_reduction <add>, %21, %cst_18 [1] : vector<4x12x128xf32> to vector<4x128xf32>
    %23 = vector.shape_cast %22 : vector<4x128xf32> to vector<4x1x128xf32>
    %24 = tpu.reciprocal %23 {approx = true} : vector<4x1x128xf32> -> vector<4x1x128xf32>
    %25 = vector.broadcast %24 : vector<4x1x128xf32> to vector<4x12x128xf32>
    %26 = arith.mulf %21, %25 : vector<4x12x128xf32>
    "tpu.trace_start"() <{level = 10 : i32, message = "hdk,hkq->hdq"}> : () -> ()
    %cst_19 = arith.constant dense<0.000000e+00> : vector<4x8x128xf32>
    %27 = tpu.matmul %15, %26, %cst_19 {dimension_numbers = #tpu.dot_dimension_numbers<[2], [1], [1], [2], [0, 0, 0, 1, 1, 2], [0], [0]>} : vector<4x8x12xf32>, vector<4x12x128xf32>, vector<4x8x128xf32> -> vector<4x8x128xf32>
    "tpu.trace_stop"() : () -> ()
    %28 = vector.shape_cast %27 : vector<4x8x128xf32> to vector<32x128xf32>
    %c0_20 = arith.constant 0 : index
    %c0_21 = arith.constant 0 : index
    %29 = vector.load %arg8[%c0_20, %c0_21] : memref<32x32xf32, #tpu.memory_space<vmem>>, vector<32x32xf32>
    %cst_22 = arith.constant dense<0.000000e+00> : vector<32x128xf32>
    %30 = tpu.matmul %29, %28, %cst_22 {dimension_numbers = #tpu.dot_dimension_numbers<[1], [0], [0], [1], [0, 0, 1, 1], [], []>} : vector<32x32xf32>, vector<32x128xf32>, vector<32x128xf32> -> vector<32x128xf32>
    %c0_23 = arith.constant 0 : index
    %c0_24 = arith.constant 0 : index
    %31 = vector.load %arg9[%c0_23, %c0_24] : memref<32x1xf32, #tpu.memory_space<vmem>>, vector<32x1xf32>
    %32 = vector.broadcast %31 : vector<32x1xf32> to vector<32x128xf32>
    %33 = arith.addf %30, %32 : vector<32x128xf32>
    %c0_25 = arith.constant 0 : index
    %c0_26 = arith.constant 0 : index
    %c0_27 = arith.constant 0 : index
    %34 = vector.load %arg10[%c0_25, %c0_26, %c0_27] : memref<1x32x128xf32, #tpu.memory_space<vmem>>, vector<1x32x128xf32>
    %35 = vector.shape_cast %34 : vector<1x32x128xf32> to vector<32x128xf32>
    %36 = vector.shape_cast %33 : vector<32x128xf32> to vector<1x32x128xf32>
    tpu.vector_store %arg10[%c0_25, %c0_26, %c0_27], %36 {strides = array<i32>} : memref<1x32x128xf32, #tpu.memory_space<vmem>>, vector<1x32x128xf32>,
    return
  }
  func.func @transform_0(%arg0: i32, %arg1: i32) -> (i32, i32, i32) {
    %c0_i32 = arith.constant 0 : i32
    %c0_i32_0 = arith.constant 0 : i32
    return %arg0, %c0_i32, %arg1 : i32, i32, i32
  }
  func.func @transform_1(%arg0: i32, %arg1: i32) -> (i32, i32, i32) {
    %c0_i32 = arith.constant 0 : i32
    %c0_i32_0 = arith.constant 0 : i32
    %c0_i32_1 = arith.constant 0 : i32
    return %arg0, %c0_i32, %c0_i32_0 : i32, i32, i32
  }
  func.func @transform_2(%arg0: i32, %arg1: i32) -> (i32, i32, i32) {
    %c0_i32 = arith.constant 0 : i32
    %c0_i32_0 = arith.constant 0 : i32
    %c0_i32_1 = arith.constant 0 : i32
    return %arg0, %c0_i32, %c0_i32_0 : i32, i32, i32
  }
  func.func @transform_3(%arg0: i32, %arg1: i32) -> (i32, i32) {
    %c0_i32 = arith.constant 0 : i32
    %c0_i32_0 = arith.constant 0 : i32
    %c0_i32_1 = arith.constant 0 : i32
    return %c0_i32, %c0_i32_0 : i32, i32
  }
  func.func @transform_4(%arg0: i32, %arg1: i32) -> (i32, i32) {
    %c0_i32 = arith.constant 0 : i32
    %c0_i32_0 = arith.constant 0 : i32
    %c0_i32_1 = arith.constant 0 : i32
    return %c0_i32, %c0_i32_0 : i32, i32
  }
  func.func @transform_5(%arg0: i32, %arg1: i32) -> (i32, i32) {
    %c0_i32 = arith.constant 0 : i32
    %c0_i32_0 = arith.constant 0 : i32
    %c0_i32_1 = arith.constant 0 : i32
    return %c0_i32, %c0_i32_0 : i32, i32
  }
  func.func @transform_6(%arg0: i32, %arg1: i32) -> (i32, i32) {
    %c0_i32 = arith.constant 0 : i32
    %c0_i32_0 = arith.constant 0 : i32
    %c0_i32_1 = arith.constant 0 : i32
    return %c0_i32, %c0_i32_0 : i32, i32
  }
  func.func @transform_7(%arg0: i32, %arg1: i32) -> (i32, i32) {
    %c0_i32 = arith.constant 0 : i32
    %c0_i32_0 = arith.constant 0 : i32
    %c0_i32_1 = arith.constant 0 : i32
    return %c0_i32, %c0_i32_0 : i32, i32
  }
  func.func @transform_8(%arg0: i32, %arg1: i32) -> (i32, i32, i32) {
    %c0_i32 = arith.constant 0 : i32
    %c0_i32_0 = arith.constant 0 : i32
    return %arg0, %c0_i32, %arg1 : i32, i32, i32
  }
}

</mosaic_0001>

<bundles_post_ra>
// kernel: tpu_custom_call.1
= control target key start
LH: loop header
LB: loop body
LE: loop exit
PB: predicated region body
PF: predicated region fallthrough
CT: control target
= control target key end

     0   :  { %13 = vsyncpa [#allocation4], 0  ;;  %s2586_s0 = inlined_call_operand.vmem [shape: f32[2,32,256], index: 0, kind: input, shape index: {}]   ;;  %s2587_s1 = inlined_call_operand.vmem [shape: f32[2,16,12], index: 1, kind: input, shape index: {}]   ;;  %s2588_s2 = inlined_call_operand.vmem [shape: f32[2,24,12], index: 2, kind: input, shape index: {}]   ;;  %s2589_s3 = inlined_call_operand.vmem [shape: f32[32,32], index: 3, kind: input, shape index: {}]   ;;  %s2590_s4 = inlined_call_operand.vmem [shape: f32[32,16], index: 4, kind: input, shape index: {}]   ;;  %s2591_s5 = inlined_call_operand.vmem [shape: f32[32,24], index: 5, kind: input, shape index: {}]   ;;  %s2592_s6 = inlined_call_operand.vmem [shape: f32[32,32], index: 6, kind: input, shape index: {}]   ;;  %s2593_s7 = inlined_call_operand.vmem [shape: f32[32,1], index: 7, kind: input, shape index: {}]   ;;  %s2594_s8 = inlined_call_operand.hbm [shape: f32[2,32,256], index: 8, kind: output, shape index: {}]  }
   0x1   :  { %15 = vsyncpa [#allocation4 + $0x1], 0  ;;  %s2292_s27 = smov 0   ;;  %s2294_s28 = smov 0  }
   0x2   :  { %s2296_s29 = smov 0   ;;  %s2298_s30 = smov 0  }
   0x3   :  { %s2300_s9 = smov 0   ;;  %s2302_s10 = smov 0  }
   0x4   :  { %s2304_s11 = smov 0   ;;  %s2306_s12 = smov 0  }
   0x5 LB: > { %s1834_s13 = sadd.s32 4294967295, %s2238_s12   ;;  %s1835_s14 = sadd.s32 4294967294, %s2238_s12   ;;  %s2238_s12 = sphi %s2306_s12, %s21_s12   ;;  %s2234_s11 = sphi %s2304_s11, %s2612_s11   ;;  %s2230_s10 = sphi %s2302_s10, %s2611_s10   ;;  %s2226_s9 = sphi %s2300_s9, %s2610_s9   ;;  %s2222_s30 = sphi %s2298_s30, %s2609_s30   ;;  %s2218_s29 = sphi %s2296_s29, %s2608_s29   ;;  %s2214_s28 = sphi %s2294_s28, %s2607_s28   ;;  %s2210_s27 = sphi %s2292_s27, %s2606_s27  }
   0x6   : > { %s30_s15 = sadd.s32 1, %s2230_s10  ;;  %s33_s16 = sadd.s32 1, %s2234_s11 }
   0x7   : > { %p31_p0 = scmp.ge.s32.totalorder %s30_s15, 2  ;;  %p49_p1 = scmp.ne.s32.totalorder %s2218_s29, %s2214_s28 }
   0x8   : > { %p50_p2 = scmp.eq.s32.totalorder %s2238_s12, 0  ;;  %p238_p5 = scmp.eq.s32.totalorder %s1834_s13, 3 }
   0x9   : > { %s2614_s15 = smov (%p31_p0, %s30_s15), 0  ;;  %s2616_s16 = smov (!%p31_p0, %s33_s16), %s2234_s11 }
   0xa   : > { %2598 = sst [smem:[#allocation6_spill]] %s2614_s15  ;;  %s38_s17 = ssub.s32 %s2230_s10, %s2614_s15 }
   0xb   : > { %p2344_p3 = por %p50_p2, %p49_p1  ;;  %p35_p4 = scmp.ge.s32.totalorder %s2616_s16, 2 }
   0xc   : > { %p243_p6 = scmp.ne.s32.totalorder %s2214_s28, %s2210_s27  ;;  %p244_p7 = scmp.eq.s32.totalorder %s1835_s14, 3 }
   0xd   : > { %s2618_s16 = smov (%p35_p4, %s2616_s16), 0  ;;  %p2352_p8 = por %p238_p5, %p49_p1 }
   0xe   : > { %2600 = sst [smem:[#allocation7_spill]] %s2618_s16  ;;  %p2356_p9 = por %p244_p7, %p243_p6 }
   0xf   : > { %s37_s21 = ssub.s32 %s2234_s11, %s2618_s16  ;;  %s42_s23 = sadd.s32 1, %s2218_s29 }
  0x10   : > { %s39_s22 = sor.u32 %s38_s17, %s37_s21  ;;  %p1837_p11 = scmp.ge.s32.totalorder %s2238_s12, 4 }
  0x11   : > { %p40_p10 = scmp.eq.s32.totalorder %s39_s22, 0 }
  0x12   : > { %275 = sbr.rel (%p1837_p11) target bundleno = 31 (0x1f), region = 36 }
  0x13   : > { %s2364_s24 = scalar_select %p40_p10, %s2218_s29, %s42_s23  }
  0x17   : > { %278 = sbr.rel (!%p2344_p3) target bundleno = 31 (0x1f), region = 40  ;;  %s280_s25 = sand.u32 (%p2344_p3), 1, %s2218_s29  }
  0x18   : > { %s1839_s26 = sshll.u32 (%p2344_p3), %s2234_s11, 3  ;;  %s1838_s13 = sshll.u32 (%p2344_p3), %s280_s25, 5 }
  0x19   : > { %s284_s14 = sadd.s32 (%p2344_p3), %s2230_s10, %s1839_s26  ;;  %s282_s22 = scalar_lea.vmem (%p2344_p3), [#allocation2], %s1838_s13 }
  0x1a   : > { %s1840_s15 = sshll.u32 (%p2344_p3), %s284_s14, 3 }
  0x1b   : > { %s286_s21 = scalar_lea.vmem (%p2344_p3), %s2586_s0, %s1840_s15 }
  0x1c   : > { %v321_v0 = vld [vmem:[%s286_s21] sm:$0xff]  ;;  %v323_v1 = vld [vmem:[%s286_s21 + $0x10] sm:$0xff] }
  0x1d   : > { %v325_v2 = vld [vmem:[%s286_s21 + $0x20] sm:$0xff]  ;;  %322 = vst [vmem:[%s282_s22] sm:$0xff] %v321_v0  ;;  %324 = vst [vmem:[%s282_s22 + $0x8] sm:$0xff] %v323_v1  ;;  %v327_v3 = vld [vmem:[%s286_s21 + $0x30] sm:$0xff] }
  0x1e   : > { %326 = vst [vmem:[%s282_s22 + $0x10] sm:$0xff] %v325_v2  ;;  %328 = vst [vmem:[%s282_s22 + $0x18] sm:$0xff] %v327_v3 }
  0x1f PF: > { %p1841_p12 = scmp.ge.s32.totalorder %s2238_s12, 1  ;;  %p349_p13 = scmp.lt.s32.totalorder %s2238_s12, 5 }
  0x21   : > { %p350_p0 = pnand %p1841_p12, %p349_p13 }
  0x22   : > { %p399_p1 = scmp.lt.s32.totalorder (!%p350_p0), %s2226_s9, 1  ;;  %s2597_s18 = sand.u32 (!%p350_p0), 1, %s2214_s28  }
  0x23   : > { %353 = sbr.rel (%p350_p0) target bundleno = 1065 (0x429), region = 86  ;;  %s2385_s23 = sshll.u32 (!%p350_p0), %s2597_s18, 5 }
  0x24   : > { %s358_s17 = scalar_lea.vmem (!%p350_p0), [#allocation2], %s2385_s23  ;;  %s1880_s16 = sshll.u32 (!%p350_p0), %s2226_s9, 3 }
  0x25   : > { %s1724_s25 = sadd.s32 (!%p350_p0), %s2222_s30, %s1880_s16 }
  0x26   : > { %s1881_s21 = sshll.u32 (!%p350_p0), %s1724_s25, 7 }
  0x28   : > { %v520_v4 = vld [vmem:[%s2590_s4] sm:$0xff]  ;;  %vm524_vm0 = vcmask 130048   ;;  %vm422_vm1 = vcmask 261120   ;;  %s2391_s13 = scalar_select %p399_p1, %s2226_s9, 1  ;;  %v412_v6 = vld [vmem:[%s358_s17 + $0x18] sm:$0xff]  ;;  %v411_v7 = vld [vmem:[%s358_s17 + $0x10] sm:$0xff] }
  0x29   : > { %1956 = vmatprep.mubr.msk.f32.mxu1 %vm524_vm0, %v520_v4  ;;  %v418_v5 = vld [vmem:[%s2589_s3] sm:$0xff]  ;;  %1938 = vmatprep.subr.mxu0 %v412_v6  ;;  %v410_v10 = vld [vmem:[%s358_s17 + $0x8] sm:$0xff]  ;;  %v522_v13 = vld [vmem:[%s2590_s4 + $0x10] sm:$0xff]  ;;  %vm626_vm2 = vcmask 195584   ;;  %vm852_vm3 = vcmask 64512   ;;  %v2240_v41 = vmov 0.0  }
  0x2a   : > { %1946 = vmatprep.mubr.msk.f32.mxu0 %vm422_vm1, %v418_v5  ;;  %s1884_s14 = sshll.u32 %s2391_s13, 4  ;;  %1939 = vmatpush3.msra.mxu0 %v412_v6  ;;  %v521_v11 = vld [vmem:[%s2590_s4 + $0x8] sm:$0xff]  ;;  %v409_v12 = vld [vmem:[%s358_s17] sm:$0xff]  ;;  %v420_v15 = vld [vmem:[%s2589_s3 + $0x10] sm:$0xff]  ;;  %s2042_s26 = smul.u32 24, %s2391_s13  ;;  %vm2241_vm4 = vmmov 0  }
  0x2b   : > { %s403_s15 = scalar_lea.vmem %s2587_s1, %s1884_s14  ;;  %1940 = vmatprep.subr.mxu0 %v411_v7  ;;  %v419_v14 = vld [vmem:[%s2589_s3 + $0x8] sm:$0xff]  ;;  %v523_v16 = vld [vmem:[%s2590_s4 + $0x18] sm:$0xff]  ;;  %v622_v18 = vld [vmem:[%s2591_s5] sm:$0xff]  ;;  %vm1177_vm5 = vcmask 1043456   ;;  %vm1278_vm6 = vcmask 97280   ;;  %s2243_s13 = smov [#allocation3]  }
  0x2c   : > { %v414_v8 = vld [vmem:[%s403_s15 + $0x8] sm:$0xff]  ;;  %v413_v9 = vld [vmem:[%s403_s15] sm:$0xff]  ;;  %1941 = vmatpush3.msra.mxu0 %v411_v7  ;;  %v421_v17 = vld [vmem:[%s2589_s3 + $0x18] sm:$0xff]  ;;  %s408_s22 = scalar_lea.vmem %s2588_s2, %s2042_s26  ;;  %s398_s26 = scalar_lea.vmem [#allocation3], %s2385_s23 }
  0x2d   : > { %1952 = vmatprep.subr.mxu1 %v414_v8  ;;  %1942 = vmatprep.subr.mxu0 %v410_v10  ;;  %v417_v19 = vld [vmem:[%s408_s22 + $0x10] sm:$0xff]  ;;  %v416_v20 = vld [vmem:[%s408_s22 + $0x8] sm:$0xff]  ;;  %v415_v21 = vld [vmem:[%s408_s22] sm:$0xff]  ;;  %s1727_s14 = sshll.u32 %s398_s26, 4  ;;  %s2531_s23 = scalar_lea.hbm %s2594_s8, %s1881_s21  ;;  %s2526_s14 = int_to_ptr.vmem [resolvable:$true] %s1727_s14 }
  0x2e   : > { %1953 = vmatpush3.msra.mxu1 %v414_v8  ;;  %1943 = vmatpush3.msra.mxu0 %v410_v10  ;;  %v623_v22 = vld [vmem:[%s2591_s5 + $0x8] sm:$0xff]  ;;  %v624_v30 = vld [vmem:[%s2591_s5 + $0x10] sm:$0xff]  ;;  %v625_v32 = vld [vmem:[%s2591_s5 + $0x18] sm:$0xff]  ;;  %s2603_s22 = sand.u32 1, %s2214_s28   ;;  %s2146_s17 = scalar_lea.vmem %s2526_s14, 512 }
  0x2f   : > { %1954 = vmatprep.subr.mxu1 %v413_v9  ;;  %1944 = vmatprep.subr.mxu0 %v409_v12  ;;  %s2535_s15 = scalar_lea.sflag [#allocation4], %s2603_s22  ;;  %p2147_p2 = scmp.ne.s32.totalorder %s2526_s14, %s2146_s17 }
  0x30   : > { %1955 = vmatpush3.msra.mxu1 %v413_v9  ;;  %1945 = vmatpush3.msra.mxu0 %v409_v12  ;;  %s2150_s18 = sshll.u32 %s2243_s13, 4  ;;  %s2151_s18 = int_to_ptr.vmem [resolvable:$false] %s2150_s18 }
  0x31   : > { %1957 = vmatmul.mubr.msk.f32.vlgmr.msra.gmra.mxu1 %vm524_vm0, %v521_v11  ;;  %1947 = vmatmul.mubr.msk.f32.vlgmr.msra.gmra.mxu0 %vm422_vm1, %v419_v14  ;;  %p2148_p3 = pnand %p2147_p2, %p2352_p8  ;;  %s2152_s16 = scalar_lea.vmem %s2151_s18, 1024 }
  0x32   : > { %1959 = vmatprep.mubr.msk.f32.mxu1 %vm524_vm0, %v522_v13  ;;  %1949 = vmatprep.mubr.msk.f32.mxu0 %vm422_vm1, %v420_v15  ;;  %p2153_p5 = scmp.lt.s32.totalorder %s2526_s14, %s2151_s18  ;;  %p2154_p6 = scmp.lt.s32.totalorder %s2152_s16, %s2146_s17 }
  0x33   : > { %1962 = vmatprep.subr.mxu0 %v417_v19  ;;  %2036 = vmatprep.subr.mxu1 %v417_v19  ;;  %p2149_p4 = pneg %p2148_p3 }
  0x34   : > { %1963 = vmatpush3.msra.mxu0 %v417_v19  ;;  %2039 = vmatpush3.msra.mxu1 %v417_v19  ;;  %p2155_p7 = por %p2154_p6, %p2153_p5 }
  0x35   : > { %1960 = vmatmul.mubr.msk.f32.gmra.mxu1 %vm524_vm0, %v523_v16  ;;  %1950 = vmatmul.mubr.msk.f32.gmra.mxu0 %vm422_vm1, %v421_v17 }
  0x36   : > { %1968 = vmatprep.mubr.msk.f32.mxu0 %vm626_vm2, %v622_v18  ;;  %1964 = vmatprep.subr.mxu0 %v416_v20  ;;  %p2156_p10 = pnand %p2155_p7, %p2149_p4 }
  0x37   : > { %2037 = vmatprep.subr.mxu1 %v416_v20  ;;  %1965 = vmatpush3.msra.mxu0 %v416_v20 }
  0x38   : > { %2040 = vmatpush3.msra.mxu1 %v416_v20  ;;  %1966 = vmatprep.subr.mxu0 %v415_v21 }
  0x39   : > { %2038 = vmatprep.subr.mxu1 %v415_v21  ;;  %1967 = vmatpush3.msra.mxu0 %v415_v21 }
  0x3a   : > { %2041 = vmatpush3.msra.mxu1 %v415_v21  ;;  %1969 = vmatmul.mubr.msk.f32.vlgmr.msra.gmra.mxu0 %vm626_vm2, %v623_v22 }
  0x3b   : > { %1971 = vmatprep.mubr.msk.f32.mxu1 %vm626_vm2, %v624_v30 }
  0x3c   : > { %1972 = vmatmul.mubr.msk.f32.vlgmr.msra.gmra.mxu1 %vm626_vm2, %v625_v32 }
  0xf1   : > { %v1958_v23 = vpop.f32.mrf.mxu1  ;;  %v1948_v25 = vpop.f32.mrf.mxu0 }
  0xf3   : > { %v603_v24 = vpop.f32.mrf.mxu1  ;;  %v501_v27 = vpop.f32.mrf.mxu0 }
  0xf4   : > { %724 = vxpose.xlu0.b32.start.end [1/1] (short) (narrow) %v603_v24, 16  ;;  %1974 = vmatprep.subr.mxu0 %v501_v27 }
  0xf5   : > { %v1961_v26 = vpop.f32.mrf.mxu1  ;;  %1975 = vmatpush3.msra.mxu0 %v501_v27  ;;  %v1951_v29 = vpop.f32.mrf.mxu0 }
  0xf6   : > { %820 = vxpose.xlu1.b32.start.end [1/1] (short) (narrow) %v1961_v26, 16  ;;  %1979 = vmatprep.subr.mxu0 %v1948_v25 }
  0xf7   : > { %v613_v28 = vpop.f32.mrf.mxu1  ;;  %v511_v31 = vpop.f32.mrf.mxu0 }
  0xf8   : > { %1984 = vmatprep.subr.mxu1 %v511_v31 }
  0xf9   : > { %756 = vxpose.xlu0.b32.start.end [1/1] (short) (narrow) %v1958_v23, 16  ;;  %1985 = vmatpush3.msra.mxu1 %v511_v31 }
  0xfa   : > { %1994 = vmatprep.subr.mxu1 %v2240_v41  ;;  %v2457_v42 = vpop.f32.mrf.mxu0 }
  0xfb   : > { %788 = vxpose.xlu1.b32.start.end [1/1] (short) (narrow) %v613_v28, 16 }
  0xfc   : > { %v2459_v43 = vpop.f32.mrf.mxu0  ;;  %v2462_v47 = vpop.f32.mrf.mxu1 }
  0xfe   : > { %v2464_v50 = vpop.f32.mrf.mxu1 }
 0x170   : > { %v740_v33 = vpop.trf.xlu0 }
 0x171   : > { %1976 = vmatprep.mubr.msk.f32.mxu0 %vm852_vm3, %v740_v33 }
 0x172   : > { %v836_v34 = vpop.trf.xlu1 }
 0x174   : > { %v741_v35 = vpop.trf.xlu0 }
 0x175   : > { %1977 = vmatmul.mubr.msk.f32.vlgmr.msra.gmra.mxu0 %vm852_vm3, %v741_v35 }
 0x176   : > { %1980 = vmatpush3.msra.mxu0 %v1948_v25  ;;  %v837_v36 = vpop.trf.xlu1 }
 0x177   : > { %1989 = vmatprep.subr.mxu0 %v1951_v29 }
 0x178   : > { %v772_v37 = vpop.trf.xlu0 }
 0x179   : > { %1981 = vmatprep.mubr.msk.f32.mxu0 %vm852_vm3, %v772_v37 }
 0x17a   : > { %v804_v38 = vpop.trf.xlu1 }
 0x17b   : > { %1986 = vmatprep.mubr.msk.f32.mxu1 %vm852_vm3, %v804_v38 }
 0x17c   : > { %v773_v39 = vpop.trf.xlu0 }
 0x17d   : > { %1982 = vmatmul.mubr.msk.f32.vlgmr.msra.gmra.mxu0 %vm852_vm3, %v773_v39 }
 0x17e   : > { %1990 = vmatpush3.msra.mxu0 %v1951_v29  ;;  %v805_v40 = vpop.trf.xlu1  ;;  %1991 = vmatprep.mubr.msk.f32.mxu0 %vm852_vm3, %v836_v34 }
 0x17f   : > { %1987 = vmatmul.mubr.msk.f32.vlgmr.msra.gmra.mxu1 %vm852_vm3, %v805_v40  ;;  %2001 = vmatprep.subr.mxu0 %v2240_v41 }
 0x180   : > { %1998 = vmatprep.mubr.msk.f32.mxu1 %vm2241_vm4, %v2240_v41 }
 0x181   : > { %1992 = vmatmul.mubr.msk.f32.vlgmr.msra.gmra.mxu0 %vm852_vm3, %v837_v36 }
 0x182   : > { %2005 = vmatprep.mubr.msk.f32.mxu0 %vm2241_vm4, %v2240_v41 }
 0x235   : > { %v1978_v44 = vpop.f32.mrf.mxu0 }
 0x236   : > { %v1178_v45 = vsel %vm1177_vm5, %v1978_v44, -inf }
 0x237   : > { %v925_v46 = vpop.f32.mrf.mxu0 }
 0x238   : > { %v1179_v48 = vmax.f32 %v925_v46, %v1178_v45 }
 0x23a   : > { %v1180_v49 = vrot.slane %v1179_v48, 4 }
 0x23c   : > { %v1181_v51 = vmax.f32 %v1179_v48, %v1180_v49 }
 0x23d   : > { %v1983_v52 = vpop.f32.mrf.mxu0 }
 0x23e   : > { %v1182_v53 = vrot.slane %v1181_v51, 2  ;;  %v1186_v54 = vsel %vm1177_vm5, %v1983_v52, -inf }
 0x23f   : > { %v1006_v55 = vpop.f32.mrf.mxu0  ;;  %v1988_v56 = vpop.f32.mrf.mxu1 }
 0x240   : > { %v1183_v57 = vmax.f32 %v1181_v51, %v1182_v53  ;;  %v1187_v58 = vmax.f32 %v1006_v55, %v1186_v54  ;;  %v1194_v59 = vsel %vm1177_vm5, %v1988_v56, -inf }
 0x241   : > { %v1087_v60 = vpop.f32.mrf.mxu1  ;;  %v1993_v61 = vpop.f32.mrf.mxu0 }
 0x242   : > { %v1184_v62 = vrot.slane %v1183_v57, 1  ;;  %v1188_v63 = vrot.slane %v1187_v58, 4  ;;  %v1195_v0 = vmax.f32 %v1087_v60, %v1194_v59  ;;  %v1202_v1 = vsel %vm1177_vm5, %v1993_v61, -inf }
 0x243   : > { %v1168_v2 = vpop.f32.mrf.mxu0 }
 0x244   : > { %v1185_v3 = vmax.f32 %v1183_v57, %v1184_v62  ;;  %v1189_v4 = vmax.f32 %v1187_v58, %v1188_v63  ;;  %v1196_v5 = vrot.slane %v1195_v0, 4  ;;  %v1203_v6 = vmax.f32 %v1168_v2, %v1202_v1 }
 0x246   : > { %v1210_v7 = vsub.f32 %v925_v46, %v1185_v3  ;;  %v1211_v8 = vsub.f32 %v1978_v44, %v1185_v3  ;;  %v1190_v9 = vrot.slane %v1189_v4, 2  ;;  %v1197_v10 = vmax.f32 %v1195_v0, %v1196_v5 }
 0x247   : > { %v1204_v11 = vrot.slane %v1203_v6, 4 }
 0x248   : > { %v1218_v12 = vmul.f32 1.442695, %v1210_v7  ;;  %v1220_v13 = vmul.f32 1.442695, %v1211_v8  ;;  %v1191_v14 = vmax.f32 %v1189_v4, %v1190_v9  ;;  %v1198_v15 = vrot.slane %v1197_v10, 2 }
 0x249   : > { %v1205_v16 = vmax.f32 %v1203_v6, %v1204_v11 }
 0x24a   : > { %2122 = vpow2.f32 %v1218_v12  ;;  %v1192_v17 = vrot.slane %v1191_v14, 1  ;;  %v1199_v18 = vmax.f32 %v1197_v10, %v1198_v15 }
 0x24b   : > { %2124 = vpow2.f32 %v1220_v13  ;;  %v1206_v19 = vrot.slane %v1205_v16, 2 }
 0x24c   : > { %v1193_v20 = vmax.f32 %v1191_v14, %v1192_v17  ;;  %v1200_v21 = vrot.slane %v1199_v18, 1 }
 0x24d   : > { %v1207_v22 = vmax.f32 %v1205_v16, %v1206_v19 }
 0x24e   : > { %v1212_v23 = vsub.f32 %v1006_v55, %v1193_v20  ;;  %v1213_v24 = vsub.f32 %v1983_v52, %v1193_v20  ;;  %v1201_v25 = vmax.f32 %v1199_v18, %v1200_v21 }
 0x24f   : > { %v1208_v26 = vrot.slane %v1207_v22, 1 }
 0x250   : > { %v1222_v27 = vmul.f32 1.442695, %v1212_v23  ;;  %v1224_v28 = vmul.f32 1.442695, %v1213_v24  ;;  %v1214_v29 = vsub.f32 %v1087_v60, %v1201_v25  ;;  %v1215_v30 = vsub.f32 %v1988_v56, %v1201_v25 }
 0x251   : > { %v1209_v31 = vmax.f32 %v1207_v22, %v1208_v26 }
 0x252   : > { %2126 = vpow2.f32 %v1222_v27  ;;  %v1226_v32 = vmul.f32 1.442695, %v1214_v29  ;;  %v1228_v33 = vmul.f32 1.442695, %v1215_v30  ;;  %v2242_v30 = vmov 0  }
 0x253   : > { %2128 = vpow2.f32 %v1224_v28  ;;  %v1216_v34 = vsub.f32 %v1168_v2, %v1209_v31  ;;  %v1217_v35 = vsub.f32 %v1993_v61, %v1209_v31  ;;  %2121 = vset.pattern.permute.xlu1 %v2242_v30  ;;  %2120 = vset.pattern.permute.xlu0 %v2242_v30  ;;  %v1590_v31 = vld [vmem:[%s2593_s7 + $0x18] sm:$0xff] }
 0x254   : > { %2130 = vpow2.f32 %v1226_v32 }
 0x255   : > { %2132 = vpow2.f32 %v1228_v33  ;;  %v1230_v36 = vmul.f32 1.442695, %v1216_v34  ;;  %v1232_v37 = vmul.f32 1.442695, %v1217_v35 }
 0x257   : > { %v2123_v38 = vpop.eup %2122  ;;  %2134 = vpow2.f32 %v1230_v36 }
 0x258   : > { %v2125_v39 = vpop.eup %2124  ;;  %2136 = vpow2.f32 %v1232_v37 }
 0x259   : > { %v1234_v40 = vsel %vm1177_vm5, %v2125_v39, 0.0 }
 0x25a   : > { %v1235_v44 = vadd.f32 %v2123_v38, %v1234_v40  ;;  %v1584_v40 = vld [vmem:[%s2592_s6 + $0x8] sm:$0xff] }
 0x25c   : > { %v1236_v45 = vrot.slane %v1235_v44, 4 }
 0x25e   : > { %v1237_v46 = vadd.f32 %v1236_v45, %v1235_v44  ;;  %v1585_v44 = vld [vmem:[%s2592_s6 + $0x10] sm:$0xff]  ;;  %v1586_v45 = vld [vmem:[%s2592_s6 + $0x18] sm:$0xff] }
 0x25f   : > { %v2127_v48 = vpop.eup %2126 }
 0x260   : > { %v2129_v49 = vpop.eup %2128  ;;  %v1238_v51 = vrot.slane %v1237_v46, 2 }
 0x261   : > { %v2131_v52 = vpop.eup %2130  ;;  %v1242_v53 = vsel %vm1177_vm5, %v2129_v49, 0.0 }
 0x262   : > { %v2133_v54 = vpop.eup %2132  ;;  %v1239_v55 = vadd.f32 %v1238_v51, %v1237_v46  ;;  %v1243_v56 = vadd.f32 %v2127_v48, %v1242_v53 }
 0x263   : > { %v1250_v57 = vsel %vm1177_vm5, %v2133_v54, 0.0 }
 0x264   : > { %v2135_v58 = vpop.eup %2134  ;;  %v1240_v59 = vrot.slane %v1239_v55, 1  ;;  %v1244_v60 = vrot.slane %v1243_v56, 4  ;;  %v1251_v61 = vadd.f32 %v2131_v52, %v1250_v57 }
 0x265   : > { %v2137_v62 = vpop.eup %2136 }
 0x266   : > { %v1241_v63 = vadd.f32 %v1240_v59, %v1239_v55  ;;  %v1245_v0 = vadd.f32 %v1244_v60, %v1243_v56  ;;  %v1252_v1 = vrot.slane %v1251_v61, 4  ;;  %v1258_v2 = vsel %vm1177_vm5, %v2137_v62, 0.0 }
 0x267   : > { %v1259_v3 = vadd.f32 %v2135_v58, %v1258_v2 }
 0x268   : > { %2138 = vrcp.f32 %v1241_v63  ;;  %v1246_v4 = vrot.slane %v1245_v0, 2  ;;  %v1253_v5 = vadd.f32 %v1252_v1, %v1251_v61 }
 0x269   : > { %v1260_v6 = vrot.slane %v1259_v3, 4 }
 0x26a   : > { %v1247_v7 = vadd.f32 %v1246_v4, %v1245_v0  ;;  %v1254_v8 = vrot.slane %v1253_v5, 2 }
 0x26b   : > { %v1261_v9 = vadd.f32 %v1260_v6, %v1259_v3 }
 0x26c   : > { %v1248_v10 = vrot.slane %v1247_v7, 1  ;;  %v1255_v11 = vadd.f32 %v1254_v8, %v1253_v5 }
 0x26d   : > { %v1262_v12 = vrot.slane %v1261_v9, 2 }
 0x26e   : > { %v1249_v13 = vadd.f32 %v1248_v10, %v1247_v7  ;;  %v1256_v14 = vrot.slane %v1255_v11, 1 }
 0x26f   : > { %v1263_v15 = vadd.f32 %v1262_v12, %v1261_v9 }
 0x270   : > { %2140 = vrcp.f32 %v1249_v13  ;;  %v1257_v16 = vadd.f32 %v1256_v14, %v1255_v11 }
 0x271   : > { %v1264_v17 = vrot.slane %v1263_v15, 1 }
 0x272   : > { %2142 = vrcp.f32 %v1257_v16 }
 0x273   : > { %v1265_v18 = vadd.f32 %v1264_v17, %v1263_v15 }
 0x275   : > { %v2139_v19 = vpop.eup %2138  ;;  %2144 = vrcp.f32 %v1265_v18 }
 0x276   : > { %v1271_v20 = vmul.f32 %v2139_v19, %v2125_v39  ;;  %v1270_v21 = vmul.f32 %v2139_v19, %v2123_v38 }
 0x278   : > { %1995 = vmatpush3.msk.msra.mxu1 %vm1177_vm5, %v1271_v20 }
 0x279   : > { %1996 = vmatprep.subr.mxu1 %v2240_v41 }
 0x27a   : > { %1997 = vmatpush3.msra.mxu1 %v1270_v21 }
 0x27b   : > { %1999 = vmatmul.mubr.msk.f32.vlgmr.msra.gmra.mxu1 %vm1278_vm6, %v2459_v43  ;;  %2008 = vmatprep.subr.mxu1 %v2240_v41 }
 0x27c   : > { %2012 = vmatprep.mubr.msk.f32.mxu1 %vm2241_vm4, %v2240_v41 }
 0x27d   : > { %v2141_v22 = vpop.eup %2140 }
 0x27e   : > { %v1273_v23 = vmul.f32 %v2141_v22, %v2129_v49  ;;  %v1272_v25 = vmul.f32 %v2141_v22, %v2127_v48 }
 0x27f   : > { %v2143_v24 = vpop.eup %2142 }
 0x280   : > { %2002 = vmatpush3.msk.msra.mxu0 %vm1177_vm5, %v1273_v23  ;;  %v1275_v26 = vmul.f32 %v2143_v24, %v2133_v54  ;;  %v1274_v28 = vmul.f32 %v2143_v24, %v2131_v52 }
 0x281   : > { %2003 = vmatprep.subr.mxu0 %v2240_v41 }
 0x282   : > { %v2145_v27 = vpop.eup %2144  ;;  %2004 = vmatpush3.msra.mxu0 %v1272_v25  ;;  %2009 = vmatpush3.msk.msra.mxu1 %vm1177_vm5, %v1275_v26 }
 0x283   : > { %2006 = vmatmul.mubr.msk.f32.vlgmr.msra.gmra.mxu0 %vm1278_vm6, %v2457_v42  ;;  %2010 = vmatprep.subr.mxu1 %v2240_v41  ;;  %v1277_v43 = vmul.f32 %v2145_v27, %v2137_v62  ;;  %v1276_v29 = vmul.f32 %v2145_v27, %v2135_v58  ;;  %v1583_v42 = vld [vmem:[%s2592_s6] sm:$0xff] }
 0x284   : > { %2015 = vmatprep.subr.mxu0 %v2240_v41  ;;  %2011 = vmatpush3.msra.mxu1 %v1274_v28 }
 0x285   : > { %2016 = vmatpush3.msk.msra.mxu0 %vm1177_vm5, %v1277_v43  ;;  %2013 = vmatmul.mubr.msk.f32.vlgmr.msra.gmra.mxu1 %vm1278_vm6, %v2464_v50  ;;  %v1588_v50 = vld [vmem:[%s2593_s7 + $0x8] sm:$0xff] }
 0x286   : > { %2017 = vmatprep.subr.mxu0 %v2240_v41  ;;  %2019 = vmatprep.mubr.msk.f32.mxu0 %vm2241_vm4, %v2240_v41  ;;  %v1587_v41 = vld [vmem:[%s2593_s7] sm:$0xff] }
 0x287   : > { %2018 = vmatpush3.msra.mxu0 %v1276_v29  ;;  %2030 = vmatprep.mubr.msk.f32.mxu1 %vm422_vm1, %v1583_v42 }
 0x288   : > { %2020 = vmatmul.mubr.msk.f32.vlgmr.msra.gmra.mxu0 %vm1278_vm6, %v2462_v47  ;;  %1598 = vperm.xlu1 %2121, %v1588_v50   ;;  %v1589_v47 = vld [vmem:[%s2593_s7 + $0x10] sm:$0xff] }
 0x289   : > { %1593 = vperm.xlu0 %2120, %v1587_v41  }
 0x28c   : > { %1603 = vperm.xlu1 %2121, %v1589_v47  }
 0x290   : > { %1608 = vperm.xlu1 %2121, %v1590_v31  }
 0x303   : > { %v1599_v46 = vpop.permute.xlu1 %1598 }
 0x304   : > { %v1594_v51 = vpop.permute.xlu0 %1593 }
 0x307   : > { %v1604_v48 = vpop.permute.xlu1 %1603 }
 0x30b   : > { %v1609_v55 = vpop.permute.xlu1 %1608 }
 0x33b   : > { %v1351_v32 = vpop.f32.mrf.mxu1 }
 0x33d   : > { %v2000_v33 = vpop.f32.mrf.mxu1 }
 0x343   : > { %v1427_v34 = vpop.f32.mrf.mxu0 }
 0x345   : > { %v2007_v35 = vpop.f32.mrf.mxu0  ;;  %v1503_v36 = vpop.f32.mrf.mxu1 }
 0x347   : > { %v2014_v37 = vpop.f32.mrf.mxu1 }
 0x348   : > { %v1579_v38 = vpop.f32.mrf.mxu0 }
 0x349   : > { %2022 = vmatprep.subr.mxu1 %v1579_v38 }
 0x34a   : > { %v2021_v39 = vpop.f32.mrf.mxu0  ;;  %2023 = vmatpush3.msra.mxu1 %v1579_v38 }
 0x34b   : > { %2024 = vmatprep.subr.mxu1 %v1503_v36 }
 0x34c   : > { %2025 = vmatpush3.msra.mxu1 %v1503_v36 }
 0x34d   : > { %2026 = vmatprep.subr.mxu1 %v1427_v34 }
 0x34e   : > { %2027 = vmatpush3.msra.mxu1 %v1427_v34 }
 0x34f   : > { %2028 = vmatprep.subr.mxu1 %v1351_v32 }
 0x350   : > { %2029 = vmatpush3.msra.mxu1 %v1351_v32 }
 0x351   : > { %2031 = vmatmul.mubr.msk.f32.vlgmr.msra.gmra.mxu1 %vm422_vm1, %v1584_v40 }
 0x352   : > { %2033 = vmatprep.mubr.msk.f32.mxu1 %vm422_vm1, %v1585_v44 }
 0x355   : > { %2034 = vmatmul.mubr.msk.f32.gmra.mxu1 %vm422_vm1, %v1586_v45 }
 0x411   : > { %v2032_v49 = vpop.f32.mrf.mxu1 }
 0x412   : > { %v1695_v52 = vadd.f32 %v2032_v49, %v1599_v46 }
 0x413   : > { %v1689_v53 = vpop.f32.mrf.mxu1 }
 0x414   : > { %1709 = vst [vmem:[%s398_s26 + $0x8] sm:$0xff] %v1695_v52  ;;  %v1690_v54 = vadd.f32 %v1689_v53, %v1594_v51 }
 0x415   : > { %v2035_v56 = vpop.f32.mrf.mxu1 }
 0x416   : > { %1708 = vst [vmem:[%s398_s26] sm:$0xff] %v1690_v54  ;;  %v1705_v57 = vadd.f32 %v2035_v56, %v1609_v55 }
 0x417   : > { %v1699_v58 = vpop.f32.mrf.mxu1 }
 0x418   : > { %1711 = vst [vmem:[%s398_s26 + $0x18] sm:$0xff] %v1705_v57  ;;  %v1700_v59 = vadd.f32 %v1699_v58, %v1604_v48 }
 0x41a   : > { %1710 = vst [vmem:[%s398_s26 + $0x10] sm:$0xff] %v1700_v59 }
 0x41b   : > { %2159 = shalt.err (!%p2156_p10)
}
 0x41c   : > { %s2160_s25 = scalar_lea.hbm %s2531_s23, 512  ;;  %s2164_s30 = scalar_lea.hbm %s2594_s8, 2048 }
 0x41d   : > { %p2161_p11 = scmp.ne.s32.totalorder %s2531_s23, %s2160_s25  ;;  %p2165_p0 = scmp.lt.s32.totalorder %s2531_s23, %s2594_s8 }
 0x41e   : > { %p2166_p1 = scmp.lt.s32.totalorder %s2164_s30, %s2160_s25 }
 0x41f   : > { %p2162_p12 = pnand %p2161_p11, %p2352_p8 }
 0x420   : > { %p2167_p2 = por %p2166_p1, %p2165_p0 }
 0x421   : > { %p2163_p13 = pneg %p2162_p12 }
 0x423   : > { %p2168_p3 = pnand %p2167_p2, %p2163_p13 }
 0x425   : > { %2171 = shalt.err (!%p2168_p3)
}
 0x426   : > { %s2244_s17 = smov 128   ;;  %s2245_s13 = smov 256  }
 0x427   : > { %s2246_s18 = smov 8  }
 0x428   : > { %2043 = dma.vmem_to_hbm [thread:$0]  (%p2352_p8), %s2526_s14, 512, %s2531_s23, %s2535_s15, %s2244_s17, %s2245_s13, %s2246_s18  }
 0x429 PF: > { %p2049_p4 = scmp.ge.s32.totalorder %s2238_s12, 2  ;;  %s1742_s16 = sand.u32 1, %s2210_s27  }
 0x42a   : > { %s1743_s25 = scalar_lea.sflag [#allocation4], %s1742_s16 }
 0x42b   : > { %p2046_p5 = pnand %p2049_p4, %p2356_p9 }
 0x42d   : > { %p2047_p6 = pneg %p2046_p5 }
 0x42f   : > { %2205 = dma.done.wait (%p2047_p6), %s1743_s25, 512  }
 0x430   : > { %2207 = vsyncadd (%p2047_p6), %s1743_s25, 4294966784  ;;  %s21_s12 = sadd.s32 1, %s2238_s12   ;;  %s2604_s19 = sld [smem:[#allocation6_spill]] }
 0x431   : > { %p18_p7 = scmp.ge.s32.totalorder %s21_s12, 6   ;;  %s2605_s14 = sld [smem:[#allocation7_spill]] }
 0x432   : > { %s2606_s27 = smov %s2214_s28  ;;  %s2607_s28 = smov %s2218_s29 }
 0x433   : > { %s2608_s29 = smov %s2364_s24  ;;  %s2609_s30 = smov %s2230_s10 }
 0x434   : > { %s2610_s9 = smov %s2234_s11  ;;  %20 = sbr.rel (!%p18_p7) target bundleno = 5 (0x5), region = 136 }
 0x436   : > { %s2611_s10 = smov %s2604_s19 }
 0x437   : > { %s2612_s11 = smov %s2605_s14 }
 0x439   :  { %1748 = vsyncpa [#allocation4], 1 }
 0x43a   :  { %1750 = vsyncpa [#allocation4 + $0x1], 1 }

</bundles_post_ra>
